<compile_context>
chip_gen: v7x
topology: tpu7x:2x2x1
jax: 0.10.0
libtpu: 0.0.40
codegen_flags: <defaults>
</compile_context>

<pallas_src>
import functools

import jax
import jax.numpy as jnp
from jax.experimental import pallas as pl
from jax.experimental.pallas import tpu as pltpu

_LANE = 128
_SUBLANE = 8


def _round_up(x: int, m: int) -> int:
    return ((x + m - 1) // m) * m


def _total_vmem_budget() -> int:
    """Generation-aware total VMEM budget for this call (bytes)."""
    try:
        cap = int(pltpu.get_tpu_info().vmem_capacity_bytes)
    except Exception:
        cap = 64 << 20  # conservative fallback: v7x physical VMEM per core
    # ~75% of physical, capped at 96 MiB (=> 48 MiB on v7x, 96 MiB on v5e/v6e).
    return min((cap * 3) // 4, 96 << 20)


def prepare_rsr_weight(A, compute_dtype=None):
    """One-time weight preparation (hoisted out of the forward path).

    Optional cast to a compute dtype (e.g. bf16) and zero-padding of K up to a
    multiple of 128 (<=127 extra rows; zero rows contribute nothing).
    """
    K, N = A.shape
    if compute_dtype is not None:
        A = A.astype(compute_dtype)
    Kpad = _round_up(K, _LANE)
    if Kpad != K:
        A = jnp.pad(A, ((0, Kpad - K), (0, 0)))
    return A


def _rsr_kernel(yf_ref, a_ref, z_ref, *, renorm: bool, tk: int, yf_resident: bool):
    k = pl.program_id(0)

    @pl.when(k == 0)
    def _():
        z_ref[...] = jnp.zeros_like(z_ref)

    if yf_resident:
        # yf is one resident (B, Kpad) block; slice the current K window.
        start = pl.multiple_of(k * tk, tk)
        yf_blk = yf_ref[:, pl.ds(start, tk)]
    else:
        yf_blk = yf_ref[...]

    # Accumulate directly into the resident f32 output block (no scratch).
    z_ref[...] += jnp.dot(yf_blk, a_ref[...], preferred_element_type=jnp.float32)

    if renorm:
        @pl.when(k == pl.num_programs(0) - 1)
        def _():
            z = z_ref[...]
            norm_sq = jnp.sum(z * z, axis=-1, keepdims=True)
            # F.normalize: z / max(||z||, 1e-12) == z * rsqrt(max(||z||^2, 1e-24))
            z_ref[...] = z * jax.lax.rsqrt(jnp.maximum(norm_sq, 1e-24))


def rsr_layer_forward(y, A_prepared, *, renorm: bool = False):
    """Pallas implementation of RSRLayer.forward.

    y:          (B, C, H, W) float32 (flattened row-major like torch.flatten(y, 1))
    A_prepared: output of prepare_rsr_weight(A[, compute_dtype]); shape (Kpad, N)
                with Kpad = round_up(in_features, 128).
    returns:    (B, N) float32
    """
    B = y.shape[0]
    yf = y.reshape(B, -1)                       # glue reshape in plain JAX
    K = yf.shape[1]
    Kpad, N = A_prepared.shape
    assert Kpad == _round_up(K, _LANE), "A_prepared K-padding does not match input"

    dtype = A_prepared.dtype
    nbytes = jnp.dtype(dtype).itemsize
    if yf.dtype != dtype:
        yf = yf.astype(dtype)                   # activation cast: cheap (B rows)
    if Kpad != K:
        yf = jnp.pad(yf, ((0, 0), (0, Kpad - K)))   # <=127 zero cols

    # --- VMEM sizing (lanes always pad to 128, sublanes to 8, in VMEM) -------
    budget = _total_vmem_budget()
    B_pad = _round_up(B, _SUBLANE)
    N_lanes = _round_up(N, _LANE)               # VMEM footprint only; HBM stays N
    out_vmem = 2 * B_pad * N_lanes * 4
    slack = 2 << 20

    # Keep yf fully resident in VMEM when small: single DMA, constant index_map.
    yf_res_vmem = 2 * B_pad * Kpad * nbytes
    yf_resident = yf_res_vmem <= budget // 4

    if yf_resident:
        avail_for_a = budget - yf_res_vmem - out_vmem - slack
        per_tk = 2 * N_lanes * nbytes                       # A double-buffered
    else:
        avail_for_a = budget - out_vmem - slack
        per_tk = 2 * N_lanes * nbytes + 2 * B_pad * nbytes  # A + streamed yf

    tk_cap = max(_LANE, (avail_for_a // per_tk) // _LANE * _LANE)

    # tk = largest multiple of 128 <= tk_cap that divides Kpad (grid_k*tk == Kpad).
    m = Kpad // _LANE
    d = 1
    for cand in range(min(m, tk_cap // _LANE), 0, -1):
        if m % cand == 0:
            d = cand
            break
    tk = d * _LANE
    grid_k = Kpad // tk

    # --- specs ----------------------------------------------------------------
    if yf_resident:
        yf_spec = pl.BlockSpec((B, Kpad), lambda k: (0, 0))
        yf_vmem = yf_res_vmem
    else:
        yf_spec = pl.BlockSpec((B, tk), lambda k: (0, k))
        yf_vmem = 2 * B_pad * tk * nbytes
    a_spec = pl.BlockSpec((tk, N), lambda k: (k, 0))        # native N, no padding
    out_spec = pl.BlockSpec((B, N), lambda k: (0, 0))        # resident accumulator

    a_vmem = 2 * tk * N_lanes * nbytes
    vmem_limit = int(max(16 << 20, a_vmem + yf_vmem + out_vmem + slack))

    cost = pl.CostEstimate(
        flops=2 * B * Kpad * N,
        transcendentals=B if renorm else 0,
        bytes_accessed=Kpad * N * nbytes + B * Kpad * nbytes + B * N * 4,
    )

    kernel = functools.partial(
        _rsr_kernel, renorm=renorm, tk=tk, yf_resident=yf_resident
    )

    z = pl.pallas_call(
        kernel,
        out_shape=jax.ShapeDtypeStruct((B, N), jnp.float32),
        grid_spec=pltpu.PrefetchScalarGridSpec(
            num_scalar_prefetch=0,
            grid=(grid_k,),
            in_specs=[yf_spec, a_spec],
            out_specs=out_spec,
        ),
        compiler_params=pltpu.CompilerParams(
            dimension_semantics=("arbitrary",),
            vmem_limit_bytes=vmem_limit,
        ),
        cost_estimate=cost,
    )(yf, A_prepared)
    return z


def _reference(y, A, renorm):
    yf = y.reshape(y.shape[0], -1)
    z = yf @ A
    if renorm:
        norm = jnp.sqrt(jnp.sum(z * z, axis=-1, keepdims=True))
        z = z / jnp.maximum(norm, 1e-12)
    return z


if __name__ == "__main__":
    # Small shapes consistent with the module:
    #   batch=2, channels=4, spatial=16x16  -> in_features = 4*16*16 = 1024
    #   intrinsic_size = 32
    B, C, H, W = 2, 4, 16, 16
    in_features = C * H * W
    intrinsic_size = 32

    key = jax.random.PRNGKey(0)
    kx, ka = jax.random.split(key)
    x = jax.random.normal(kx, (B, C, H, W), dtype=jnp.float32)
    # Deterministic "torch.randn"-style parameter init.
    A = jax.random.normal(ka, (in_features, intrinsic_size), dtype=jnp.float32)

    # Weight prep done ONCE (hoisted out of the forward path).
    A_f32 = prepare_rsr_weight(A)

    # f32 path, renorm = False
    z = jax.block_until_ready(rsr_layer_forward(x, A_f32, renorm=False))
    z_ref = _reference(x, A, renorm=False)
    assert z.shape == (B, intrinsic_size)
    assert z.dtype == jnp.float32
    assert jnp.allclose(z, z_ref, atol=1e-3, rtol=1e-3)

    # f32 path, renorm = True
    zn = jax.block_until_ready(rsr_layer_forward(x, A_f32, renorm=True))
    zn_ref = _reference(x, A, renorm=True)
    assert zn.shape == (B, intrinsic_size)
    assert jnp.allclose(zn, zn_ref, atol=1e-4, rtol=1e-4)

    # bf16 A stream (halves the dominant HBM bytes); f32 accumulate / output.
    A_bf16 = prepare_rsr_weight(A, compute_dtype=jnp.bfloat16)
    zb = jax.block_until_ready(rsr_layer_forward(x, A_bf16, renorm=False))
    zb_ref = jnp.matmul(
        x.reshape(B, -1).astype(jnp.bfloat16),
        A.astype(jnp.bfloat16),
        preferred_element_type=jnp.float32,
    )
    assert zb.dtype == jnp.float32
    assert jnp.allclose(zb, zb_ref, atol=5e-2, rtol=5e-2)

    print("KERNEL_OK")
</pallas_src>

<mosaic_0001>
module attributes {stable_mosaic.version = 11 : i64} {
  func.func @_rsr_kernel(%arg0: i32, %arg1: memref<2x1024xf32, #tpu.memory_space<vmem>>, %arg2: memref<1024x32xf32, #tpu.memory_space<vmem>>, %arg3: memref<2x32xf32, #tpu.memory_space<vmem>>) attributes {dimension_semantics = [#tpu.dimension_semantics<arbitrary>], iteration_bounds = array<i64: 1>, scalar_prefetch = 0 : i64, scratch_operands = 0 : i64, tpu.core_type = #tpu.core_type<tc>, window_params = [{pipeline_mode = #tpu.pipeline_mode<synchronous>, transform_indices = @transform_0, window_bounds = array<i64: 2, 1024>}, {transform_indices = @transform_1, window_bounds = array<i64: 1024, 32>}, {pipeline_mode = #tpu.pipeline_mode<synchronous>, transform_indices = @transform_2, window_bounds = array<i64: 2, 32>}]} {
    %c0_i32 = arith.constant 0 : i32
    %0 = arith.cmpi eq, %arg0, %c0_i32 : i32
    %1 = arith.extui %0 : i1 to i32
    %c0_i32_0 = arith.constant 0 : i32
    %2 = arith.cmpi ne, %1, %c0_i32_0 : i32
    scf.if %2 {
      %cst_7 = arith.constant 0.000000e+00 : f32
      %12 = vector.broadcast %cst_7 : f32 to vector<2x32xf32>
      %c0_8 = arith.constant 0 : index
      %c0_9 = arith.constant 0 : index
      %13 = vector.load %arg3[%c0_8, %c0_9] : memref<2x32xf32, #tpu.memory_space<vmem>>, vector<2x32xf32>
      tpu.vector_store %arg3[%c0_8, %c0_9], %12 {strides = array<i32>} : memref<2x32xf32, #tpu.memory_space<vmem>>, vector<2x32xf32>,
    } else {
    }
    %c1024_i32 = arith.constant 1024 : i32
    %3 = arith.muli %arg0, %c1024_i32 : i32
    %4 = tpu.assume_multiple %3, 1024 : i32
    %c0 = arith.constant 0 : index
    %5 = arith.index_cast %4 : i32 to index
    %6 = vector.load %arg1[%c0, %5] : memref<2x1024xf32, #tpu.memory_space<vmem>>, vector<2x1024xf32>
    %c0_1 = arith.constant 0 : index
    %c0_2 = arith.constant 0 : index
    %7 = vector.load %arg3[%c0_1, %c0_2] : memref<2x32xf32, #tpu.memory_space<vmem>>, vector<2x32xf32>
    %c0_3 = arith.constant 0 : index
    %c0_4 = arith.constant 0 : index
    %8 = vector.load %arg2[%c0_3, %c0_4] : memref<1024x32xf32, #tpu.memory_space<vmem>>, vector<1024x32xf32>
    %cst = arith.constant dense<0.000000e+00> : vector<2x32xf32>
    %9 = tpu.matmul %6, %8, %cst {dimension_numbers = #tpu.dot_dimension_numbers<[1], [0], [0], [1], [0, 0, 1, 1], [], []>} : vector<2x1024xf32>, vector<1024x32xf32>, vector<2x32xf32> -> vector<2x32xf32>
    %10 = arith.addf %7, %9 : vector<2x32xf32>
    %c0_5 = arith.constant 0 : index
    %c0_6 = arith.constant 0 : index
    %11 = vector.load %arg3[%c0_5, %c0_6] : memref<2x32xf32, #tpu.memory_space<vmem>>, vector<2x32xf32>
    tpu.vector_store %arg3[%c0_5, %c0_6], %10 {strides = array<i32>} : memref<2x32xf32, #tpu.memory_space<vmem>>, vector<2x32xf32>,
    return
  }
  func.func @transform_0(%arg0: i32) -> (i32, i32) {
    %c0_i32 = arith.constant 0 : i32
    %c0_i32_0 = arith.constant 0 : i32
    %c0_i32_1 = arith.constant 0 : i32
    return %c0_i32, %c0_i32_0 : i32, i32
  }
  func.func @transform_1(%arg0: i32) -> (i32, i32) {
    %c0_i32 = arith.constant 0 : i32
    %c0_i32_0 = arith.constant 0 : i32
    return %arg0, %c0_i32 : i32, i32
  }
  func.func @transform_2(%arg0: i32) -> (i32, i32) {
    %c0_i32 = arith.constant 0 : i32
    %c0_i32_0 = arith.constant 0 : i32
    %c0_i32_1 = arith.constant 0 : i32
    return %c0_i32, %c0_i32_0 : i32, i32
  }
}

</mosaic_0001>

<bundles_post_ra>
// kernel: tpu_custom_call.1
= control target key start
LH: loop header
LB: loop body
LE: loop exit
PB: predicated region body
PF: predicated region fallthrough
CT: control target
= control target key end

     0   :  { %v794_v47 = vmov 1983009808   ;;  %v160_v49 = vlaneseq  ;;  %s1227_s0 = inlined_call_operand.vmem [shape: f32[2,1024], index: 0, kind: input, shape index: {}]   ;;  %s1228_s1 = inlined_call_operand.vmem [shape: f32[1024,32], index: 1, kind: input, shape index: {}]   ;;  %s1229_s2 = inlined_call_operand.hbm [shape: f32[2,32], index: 2, kind: output, shape index: {}]  }
   0x1   :  { %v42_v0 = vld [vmem:[%s1228_s1 + $0x80] sm:$0xff]  ;;  %v43_v1 = vld [vmem:[%s1228_s1 + $0x88] sm:$0xff]  ;;  %v44_v11 = vld [vmem:[%s1228_s1 + $0x90] sm:$0xff]  ;;  %v158_v48 = vunpack.c.l.s4 %v794_v47 }
   0x2   :  { %v74_v2 = vld [vmem:[%s1228_s1 + $0x180] sm:$0xff]  ;;  %v637_v3 = vpack.c.bf16 %v43_v1, %v42_v0  ;;  %v75_v4 = vld [vmem:[%s1228_s1 + $0x188] sm:$0xff]  ;;  %v45_v13 = vld [vmem:[%s1228_s1 + $0x98] sm:$0xff]  ;;  %v161_v0 = vshrl.u32 %v160_v49, 7 }
   0x3   :  { %v26_v5 = vld [vmem:[%s1228_s1] sm:$0xff]  ;;  %v27_v6 = vld [vmem:[%s1228_s1 + $0x8] sm:$0xff]  ;;  %v669_v7 = vpack.c.bf16 %v75_v4, %v74_v2  ;;  %v76_v14 = vld [vmem:[%s1228_s1 + $0x190] sm:$0xff]  ;;  %v641_v16 = vpack.c.bf16 %v45_v13, %v44_v11  ;;  %v159_v63 = vunpack.c.0.s8 %v158_v48 }
   0x4   :  { %v639_v8 = vpack.c.bf16 %v27_v6, %v26_v5  ;;  %v58_v9 = vld [vmem:[%s1228_s1 + $0x100] sm:$0xff]  ;;  %v59_v10 = vld [vmem:[%s1228_s1 + $0x108] sm:$0xff]  ;;  %638 = vmatprep.subr.bf16.mxu0 %v637_v3  ;;  %v77_v15 = vld [vmem:[%s1228_s1 + $0x198] sm:$0xff] }
   0x5   :  { %v671_v12 = vpack.c.bf16 %v59_v10, %v58_v9  ;;  %670 = vmatprep.subr.bf16.mxu1 %v669_v7  ;;  %v673_v17 = vpack.c.bf16 %v77_v15, %v76_v14  ;;  %v28_v18 = vld [vmem:[%s1228_s1 + $0x10] sm:$0xff]  ;;  %v29_v19 = vld [vmem:[%s1228_s1 + $0x18] sm:$0xff]  ;;  %v46_v23 = vld [vmem:[%s1228_s1 + $0xa0] sm:$0xff]  ;;  %v962_v13 = vsub.s32 %v159_v63, %v161_v0 }
   0x6   :  { %640 = vmatpush3.bf16.msra.mxu0 %v639_v8  ;;  %v60_v20 = vld [vmem:[%s1228_s1 + $0x110] sm:$0xff]  ;;  %v643_v21 = vpack.c.bf16 %v29_v19, %v28_v18  ;;  %v61_v22 = vld [vmem:[%s1228_s1 + $0x118] sm:$0xff]  ;;  %v47_v24 = vld [vmem:[%s1228_s1 + $0xa8] sm:$0xff] }
   0x7   :  { %672 = vmatpush3.bf16.msra.mxu1 %v671_v12  ;;  %642 = vmatprep.subr.bf16.mxu0 %v641_v16  ;;  %v675_v25 = vpack.c.bf16 %v61_v22, %v60_v20  ;;  %v645_v26 = vpack.c.bf16 %v47_v24, %v46_v23  ;;  %v78_v27 = vld [vmem:[%s1228_s1 + $0x1a0] sm:$0xff]  ;;  %v79_v28 = vld [vmem:[%s1228_s1 + $0x1a8] sm:$0xff]  ;;  %v48_v35 = vld [vmem:[%s1228_s1 + $0xb0] sm:$0xff] }
   0x8   :  { %674 = vmatprep.subr.bf16.mxu1 %v673_v17  ;;  %v30_v29 = vld [vmem:[%s1228_s1 + $0x20] sm:$0xff]  ;;  %v677_v30 = vpack.c.bf16 %v79_v28, %v78_v27  ;;  %v31_v31 = vld [vmem:[%s1228_s1 + $0x28] sm:$0xff]  ;;  %v49_v36 = vld [vmem:[%s1228_s1 + $0xb8] sm:$0xff] }
   0x9   :  { %v62_v32 = vld [vmem:[%s1228_s1 + $0x120] sm:$0xff]  ;;  %v63_v33 = vld [vmem:[%s1228_s1 + $0x128] sm:$0xff]  ;;  %v647_v34 = vpack.c.bf16 %v31_v31, %v30_v29  ;;  %v80_v37 = vld [vmem:[%s1228_s1 + $0x1b0] sm:$0xff]  ;;  %v649_v39 = vpack.c.bf16 %v49_v36, %v48_v35 }
   0xa   :  { %644 = vmatpush3.bf16.msra.mxu0 %v643_v21  ;;  %v679_v38 = vpack.c.bf16 %v63_v33, %v62_v32  ;;  %v81_v40 = vld [vmem:[%s1228_s1 + $0x1b8] sm:$0xff]  ;;  %v32_v41 = vld [vmem:[%s1228_s1 + $0x30] sm:$0xff]  ;;  %v50_v46 = vld [vmem:[%s1228_s1 + $0xc0] sm:$0xff] }
   0xb   :  { %676 = vmatpush3.bf16.msra.mxu1 %v675_v25  ;;  %646 = vmatprep.subr.bf16.mxu0 %v645_v26  ;;  %v33_v42 = vld [vmem:[%s1228_s1 + $0x38] sm:$0xff]  ;;  %v681_v43 = vpack.c.bf16 %v81_v40, %v80_v37  ;;  %v64_v44 = vld [vmem:[%s1228_s1 + $0x130] sm:$0xff]  ;;  %v51_v50 = vld [vmem:[%s1228_s1 + $0xc8] sm:$0xff] }
   0xc   :  { %678 = vmatprep.subr.bf16.mxu1 %v677_v30  ;;  %v65_v45 = vld [vmem:[%s1228_s1 + $0x138] sm:$0xff]  ;;  %v82_v51 = vld [vmem:[%s1228_s1 + $0x1c0] sm:$0xff]  ;;  %v83_v52 = vld [vmem:[%s1228_s1 + $0x1c8] sm:$0xff]  ;;  %v651_v53 = vpack.c.bf16 %v33_v42, %v32_v41  ;;  %v653_v55 = vpack.c.bf16 %v51_v50, %v50_v46 }
   0xd   :  { %v683_v54 = vpack.c.bf16 %v65_v45, %v64_v44  ;;  %v34_v56 = vld [vmem:[%s1228_s1 + $0x40] sm:$0xff]  ;;  %v35_v57 = vld [vmem:[%s1228_s1 + $0x48] sm:$0xff]  ;;  %v685_v59 = vpack.c.bf16 %v83_v52, %v82_v51  ;;  %v52_v61 = vld [vmem:[%s1228_s1 + $0xd0] sm:$0xff] }
   0xe   :  { %648 = vmatpush3.bf16.msra.mxu0 %v647_v34  ;;  %v66_v58 = vld [vmem:[%s1228_s1 + $0x140] sm:$0xff]  ;;  %v67_v60 = vld [vmem:[%s1228_s1 + $0x148] sm:$0xff]  ;;  %v53_v62 = vld [vmem:[%s1228_s1 + $0xd8] sm:$0xff]  ;;  %v655_v3 = vpack.c.bf16 %v35_v57, %v34_v56 }
   0xf   :  { %680 = vmatpush3.bf16.msra.mxu1 %v679_v38  ;;  %650 = vmatprep.subr.bf16.mxu0 %v649_v39  ;;  %v84_v1 = vld [vmem:[%s1228_s1 + $0x1d0] sm:$0xff]  ;;  %v85_v2 = vld [vmem:[%s1228_s1 + $0x1d8] sm:$0xff]  ;;  %v687_v4 = vpack.c.bf16 %v67_v60, %v66_v58  ;;  %v657_v5 = vpack.c.bf16 %v53_v62, %v52_v61  ;;  %v54_v11 = vld [vmem:[%s1228_s1 + $0xe0] sm:$0xff] }
  0x10   :  { %682 = vmatprep.subr.bf16.mxu1 %v681_v43  ;;  %v36_v6 = vld [vmem:[%s1228_s1 + $0x50] sm:$0xff]  ;;  %v37_v7 = vld [vmem:[%s1228_s1 + $0x58] sm:$0xff]  ;;  %v689_v9 = vpack.c.bf16 %v85_v2, %v84_v1  ;;  %v55_v12 = vld [vmem:[%s1228_s1 + $0xe8] sm:$0xff] }
  0x11   :  { %v68_v8 = vld [vmem:[%s1228_s1 + $0x150] sm:$0xff]  ;;  %v69_v10 = vld [vmem:[%s1228_s1 + $0x158] sm:$0xff]  ;;  %v86_v14 = vld [vmem:[%s1228_s1 + $0x1e0] sm:$0xff]  ;;  %v659_v16 = vpack.c.bf16 %v37_v7, %v36_v6  ;;  %v661_v19 = vpack.c.bf16 %v55_v12, %v54_v11 }
  0x12   :  { %652 = vmatpush3.bf16.msra.mxu0 %v651_v53  ;;  %v87_v15 = vld [vmem:[%s1228_s1 + $0x1e8] sm:$0xff]  ;;  %v38_v17 = vld [vmem:[%s1228_s1 + $0x60] sm:$0xff]  ;;  %v691_v18 = vpack.c.bf16 %v69_v10, %v68_v8  ;;  %v56_v25 = vld [vmem:[%s1228_s1 + $0xf0] sm:$0xff] }
  0x13   :  { %684 = vmatpush3.bf16.msra.mxu1 %v683_v54  ;;  %654 = vmatprep.subr.bf16.mxu0 %v653_v55  ;;  %v39_v20 = vld [vmem:[%s1228_s1 + $0x68] sm:$0xff]  ;;  %v70_v21 = vld [vmem:[%s1228_s1 + $0x160] sm:$0xff]  ;;  %v693_v23 = vpack.c.bf16 %v87_v15, %v86_v14  ;;  %v57_v26 = vld [vmem:[%s1228_s1 + $0xf8] sm:$0xff] }
  0x14   :  { %686 = vmatprep.subr.bf16.mxu1 %v685_v59  ;;  %v23_v22 = vld [vmem:[%s1227_s0] sm:$0xff]  ;;  %v71_v24 = vld [vmem:[%s1228_s1 + $0x168] sm:$0xff]  ;;  %v88_v29 = vld [vmem:[%s1228_s1 + $0x1f0] sm:$0xff]  ;;  %v663_v31 = vpack.c.bf16 %v39_v20, %v38_v17  ;;  %v665_v35 = vpack.c.bf16 %v57_v26, %v56_v25 }
  0x15   :  { %v163_v27 = vrot.slane %v23_v22, %v962_v13  ;;  %v156_v28 = vcombine.high %v23_v22, %v23_v22  ;;  %v89_v30 = vld [vmem:[%s1228_s1 + $0x1f8] sm:$0xff]  ;;  %v695_v34 = vpack.c.bf16 %v71_v24, %v70_v21  ;;  %v40_v36 = vld [vmem:[%s1228_s1 + $0x70] sm:$0xff]  ;;  %v106_v42 = vld [vmem:[%s1228_s1 + $0x280] sm:$0xff] }
  0x16   :  { %656 = vmatpush3.bf16.msra.mxu0 %v655_v3  ;;  %v41_v37 = vld [vmem:[%s1228_s1 + $0x78] sm:$0xff]  ;;  %v72_v38 = vld [vmem:[%s1228_s1 + $0x170] sm:$0xff]  ;;  %v697_v39 = vpack.c.bf16 %v89_v30, %v88_v29  ;;  %v107_v43 = vld [vmem:[%s1228_s1 + $0x288] sm:$0xff] }
  0x17   :  { %688 = vmatpush3.bf16.msra.mxu1 %v687_v4  ;;  %658 = vmatprep.subr.bf16.mxu0 %v657_v5  ;;  %v171_v32 = vcombine.high %v163_v27, %v163_v27  ;;  %v170_v33 = vrot.slane %v156_v28, %v962_v13  ;;  %v73_v40 = vld [vmem:[%s1228_s1 + $0x178] sm:$0xff]  ;;  %v138_v44 = vld [vmem:[%s1228_s1 + $0x380] sm:$0xff]  ;;  %v139_v45 = vld [vmem:[%s1228_s1 + $0x388] sm:$0xff]  ;;  %v667_v46 = vpack.c.bf16 %v41_v37, %v40_v36 }
  0x18   :  { %690 = vmatprep.subr.bf16.mxu1 %v689_v9  ;;  %v699_v47 = vpack.c.bf16 %v73_v40, %v72_v38  ;;  %v701_v48 = vpack.c.bf16 %v107_v43, %v106_v42  ;;  %v90_v49 = vld [vmem:[%s1228_s1 + $0x200] sm:$0xff]  ;;  %v91_v50 = vld [vmem:[%s1228_s1 + $0x208] sm:$0xff]  ;;  %v733_v52 = vpack.c.bf16 %v139_v45, %v138_v44  ;;  %v108_v54 = vld [vmem:[%s1228_s1 + $0x290] sm:$0xff] }
  0x19   :  { %262 = vmatprep.mubr.f32.mxu0 %v171_v32  ;;  %v172_v41 = vcombine.high %v170_v33, %v170_v33  ;;  %v122_v51 = vld [vmem:[%s1228_s1 + $0x300] sm:$0xff]  ;;  %v123_v53 = vld [vmem:[%s1228_s1 + $0x308] sm:$0xff]  ;;  %v109_v55 = vld [vmem:[%s1228_s1 + $0x298] sm:$0xff]  ;;  %v703_v58 = vpack.c.bf16 %v91_v50, %v90_v49 }
  0x1a   :  { %660 = vmatpush3.bf16.msra.mxu0 %v659_v16  ;;  %v140_v56 = vld [vmem:[%s1228_s1 + $0x390] sm:$0xff]  ;;  %v141_v57 = vld [vmem:[%s1228_s1 + $0x398] sm:$0xff]  ;;  %v735_v59 = vpack.c.bf16 %v123_v53, %v122_v51  ;;  %v705_v60 = vpack.c.bf16 %v109_v55, %v108_v54  ;;  %v110_v2 = vld [vmem:[%s1228_s1 + $0x2a0] sm:$0xff] }
  0x1b   :  { %692 = vmatpush3.bf16.msra.mxu1 %v691_v18  ;;  %662 = vmatprep.subr.bf16.mxu0 %v661_v19  ;;  %v92_v61 = vld [vmem:[%s1228_s1 + $0x210] sm:$0xff]  ;;  %v93_v62 = vld [vmem:[%s1228_s1 + $0x218] sm:$0xff]  ;;  %v737_v0 = vpack.c.bf16 %v141_v57, %v140_v56  ;;  %v111_v3 = vld [vmem:[%s1228_s1 + $0x2a8] sm:$0xff] }
  0x1c   :  { %694 = vmatprep.subr.bf16.mxu1 %v693_v23  ;;  %332 = vmatprep.mubr.f32.mxu1 %v172_v41  ;;  %v124_v63 = vld [vmem:[%s1228_s1 + $0x310] sm:$0xff]  ;;  %v125_v1 = vld [vmem:[%s1228_s1 + $0x318] sm:$0xff]  ;;  %v142_v4 = vld [vmem:[%s1228_s1 + $0x3a0] sm:$0xff]  ;;  %v707_v6 = vpack.c.bf16 %v93_v62, %v92_v61  ;;  %v709_v8 = vpack.c.bf16 %v111_v3, %v110_v2 }
  0x1d   :  { %v143_v5 = vld [vmem:[%s1228_s1 + $0x3a8] sm:$0xff]  ;;  %v739_v7 = vpack.c.bf16 %v125_v1, %v124_v63  ;;  %v94_v9 = vld [vmem:[%s1228_s1 + $0x220] sm:$0xff]  ;;  %v112_v15 = vld [vmem:[%s1228_s1 + $0x2b0] sm:$0xff] }
  0x1e   :  { %664 = vmatpush3.bf16.msra.mxu0 %v663_v31  ;;  %v95_v10 = vld [vmem:[%s1228_s1 + $0x228] sm:$0xff]  ;;  %v126_v11 = vld [vmem:[%s1228_s1 + $0x320] sm:$0xff]  ;;  %v741_v12 = vpack.c.bf16 %v143_v5, %v142_v4  ;;  %v113_v16 = vld [vmem:[%s1228_s1 + $0x2b8] sm:$0xff] }
  0x1f   :  { %696 = vmatpush3.bf16.msra.mxu1 %v695_v34  ;;  %666 = vmatprep.subr.bf16.mxu0 %v665_v35  ;;  %v127_v14 = vld [vmem:[%s1228_s1 + $0x328] sm:$0xff]  ;;  %v144_v17 = vld [vmem:[%s1228_s1 + $0x3b0] sm:$0xff]  ;;  %v145_v18 = vld [vmem:[%s1228_s1 + $0x3b8] sm:$0xff]  ;;  %v711_v19 = vpack.c.bf16 %v95_v10, %v94_v9  ;;  %v713_v22 = vpack.c.bf16 %v113_v16, %v112_v15 }
  0x20   :  { %698 = vmatprep.subr.bf16.mxu1 %v697_v39  ;;  %v96_v20 = vld [vmem:[%s1228_s1 + $0x230] sm:$0xff]  ;;  %v743_v21 = vpack.c.bf16 %v127_v14, %v126_v11  ;;  %v97_v23 = vld [vmem:[%s1228_s1 + $0x238] sm:$0xff]  ;;  %v745_v26 = vpack.c.bf16 %v145_v18, %v144_v17  ;;  %v115_v28 = vld [vmem:[%s1228_s1 + $0x2c8] sm:$0xff] }
  0x21   :  { %v128_v24 = vld [vmem:[%s1228_s1 + $0x330] sm:$0xff]  ;;  %v129_v25 = vld [vmem:[%s1228_s1 + $0x338] sm:$0xff]  ;;  %v146_v29 = vld [vmem:[%s1228_s1 + $0x3c0] sm:$0xff] }
  0x22   :  { %668 = vmatpush3.bf16.msra.mxu0 %v667_v46  ;;  %v147_v30 = vld [vmem:[%s1228_s1 + $0x3c8] sm:$0xff] }
  0x23   :  { %700 = vmatpush3.bf16.msra.mxu1 %v699_v47  ;;  %702 = vmatprep.subr.bf16.mxu0 %v701_v48  ;;  %v24_v31 = vld [vmem:[%s1227_s0 + $0x8] sm:$0xff] }
  0x24   :  { %734 = vmatprep.subr.bf16.mxu1 %v733_v52 }
  0x25   :  { %263 = vmatmul.mubr.f32.vlgmr.msra.gmra.mrb[0].mxu0 %v163_v27  ;;  %v114_v27 = vld [vmem:[%s1228_s1 + $0x2c0] sm:$0xff] }
  0x26   :  { %333 = vmatmul.mubr.f32.vlgmr.msra.gmra.mrb[0].mxu1 %v170_v33  ;;  %704 = vmatpush3.bf16.msra.mxu0 %v703_v58 }
  0x27   :  { %736 = vmatpush3.bf16.msra.mxu1 %v735_v59  ;;  %706 = vmatprep.subr.bf16.mxu0 %v705_v60 }
  0x28   :  { %738 = vmatprep.subr.bf16.mxu1 %v737_v0 }
  0x2a   :  { %708 = vmatpush3.bf16.msra.mxu0 %v707_v6 }
  0x2b   :  { %740 = vmatpush3.bf16.msra.mxu1 %v739_v7  ;;  %710 = vmatprep.subr.bf16.mxu0 %v709_v8 }
  0x2c   :  { %742 = vmatprep.subr.bf16.mxu1 %v741_v12 }
  0x2d   :  { %7 = vsyncpa [#allocation3], 0  ;;  %v715_v32 = vpack.c.bf16 %v97_v23, %v96_v20  ;;  %v1123_v33 = vrot.slane %v24_v31, %v962_v13  ;;  %v173_v34 = vcombine.high %v24_v31, %v24_v31  ;;  %v747_v35 = vpack.c.bf16 %v129_v25, %v128_v24  ;;  %v98_v37 = vld [vmem:[%s1228_s1 + $0x240] sm:$0xff]  ;;  %v99_v38 = vld [vmem:[%s1228_s1 + $0x248] sm:$0xff] }
  0x2e   :  { %712 = vmatpush3.bf16.msra.mxu0 %v711_v19  ;;  %v717_v36 = vpack.c.bf16 %v115_v28, %v114_v27  ;;  %v130_v39 = vld [vmem:[%s1228_s1 + $0x340] sm:$0xff]  ;;  %v749_v40 = vpack.c.bf16 %v147_v30, %v146_v29  ;;  %v131_v41 = vld [vmem:[%s1228_s1 + $0x348] sm:$0xff]  ;;  %v116_v42 = vld [vmem:[%s1228_s1 + $0x2d0] sm:$0xff]  ;;  %v719_v48 = vpack.c.bf16 %v99_v38, %v98_v37  ;;  %vm16_vm0 = vcmask 254976  }
  0x2f   :  { %744 = vmatpush3.bf16.msra.mxu1 %v743_v21  ;;  %714 = vmatprep.subr.bf16.mxu0 %v713_v22  ;;  %v117_v43 = vld [vmem:[%s1228_s1 + $0x2d8] sm:$0xff]  ;;  %v188_v44 = vcombine.high %v1123_v33, %v1123_v33  ;;  %v187_v45 = vrot.slane %v173_v34, %v962_v13  ;;  %v148_v46 = vld [vmem:[%s1228_s1 + $0x3d0] sm:$0xff]  ;;  %v751_v50 = vpack.c.bf16 %v131_v41, %v130_v39  ;;  %v118_v56 = vld [vmem:[%s1228_s1 + $0x2e0] sm:$0xff]  ;;  %v795_v19 = vmov 0.0  }
  0x30   :  { %746 = vmatprep.subr.bf16.mxu1 %v745_v26  ;;  %v149_v47 = vld [vmem:[%s1228_s1 + $0x3d8] sm:$0xff]  ;;  %v721_v51 = vpack.c.bf16 %v117_v43, %v116_v42  ;;  %v100_v13 = vld [vmem:[%s1228_s1 + $0x250] sm:$0xff]  ;;  %v119_v57 = vld [vmem:[%s1228_s1 + $0x2e8] sm:$0xff]  ;;  %17 = vst.msk [vmem:[#allocation2] sm:$0x3] %vm16_vm0, %v795_v19 }
  0x31   :  { %402 = vmatprep.mubr.f32.mxu0 %v188_v44  ;;  %v189_v49 = vcombine.high %v187_v45, %v187_v45  ;;  %v101_v52 = vld [vmem:[%s1228_s1 + $0x258] sm:$0xff]  ;;  %v132_v53 = vld [vmem:[%s1228_s1 + $0x350] sm:$0xff]  ;;  %v753_v54 = vpack.c.bf16 %v149_v47, %v148_v46  ;;  %v150_v58 = vld [vmem:[%s1228_s1 + $0x3e0] sm:$0xff]  ;;  %v725_v62 = vpack.c.bf16 %v119_v57, %v118_v56 }
  0x32   :  { %716 = vmatpush3.bf16.msra.mxu0 %v715_v32  ;;  %v133_v55 = vld [vmem:[%s1228_s1 + $0x358] sm:$0xff]  ;;  %v151_v59 = vld [vmem:[%s1228_s1 + $0x3e8] sm:$0xff]  ;;  %v723_v60 = vpack.c.bf16 %v101_v52, %v100_v13  ;;  %v102_v63 = vld [vmem:[%s1228_s1 + $0x260] sm:$0xff] }
  0x33   :  { %748 = vmatpush3.bf16.msra.mxu1 %v747_v35  ;;  %718 = vmatprep.subr.bf16.mxu0 %v717_v36  ;;  %v755_v61 = vpack.c.bf16 %v133_v55, %v132_v53  ;;  %v103_v0 = vld [vmem:[%s1228_s1 + $0x268] sm:$0xff]  ;;  %v134_v1 = vld [vmem:[%s1228_s1 + $0x360] sm:$0xff]  ;;  %v757_v2 = vpack.c.bf16 %v151_v59, %v150_v58  ;;  %v120_v4 = vld [vmem:[%s1228_s1 + $0x2f0] sm:$0xff] }
  0x34   :  { %750 = vmatprep.subr.bf16.mxu1 %v749_v40  ;;  %472 = vmatprep.mubr.f32.mxu1 %v189_v49  ;;  %v135_v3 = vld [vmem:[%s1228_s1 + $0x368] sm:$0xff]  ;;  %v121_v5 = vld [vmem:[%s1228_s1 + $0x2f8] sm:$0xff]  ;;  %v152_v6 = vld [vmem:[%s1228_s1 + $0x3f0] sm:$0xff]  ;;  %v727_v8 = vpack.c.bf16 %v103_v0, %v102_v63 }
  0x35   :  { %v153_v7 = vld [vmem:[%s1228_s1 + $0x3f8] sm:$0xff]  ;;  %v759_v9 = vpack.c.bf16 %v135_v3, %v134_v1  ;;  %v729_v10 = vpack.c.bf16 %v121_v5, %v120_v4  ;;  %v104_v11 = vld [vmem:[%s1228_s1 + $0x270] sm:$0xff] }
  0x36   :  { %720 = vmatpush3.bf16.msra.mxu0 %v719_v48  ;;  %v105_v12 = vld [vmem:[%s1228_s1 + $0x278] sm:$0xff]  ;;  %v761_v14 = vpack.c.bf16 %v153_v7, %v152_v6  ;;  %v136_v15 = vld [vmem:[%s1228_s1 + $0x370] sm:$0xff] }
  0x37   :  { %752 = vmatpush3.bf16.msra.mxu1 %v751_v50  ;;  %722 = vmatprep.subr.bf16.mxu0 %v721_v51  ;;  %v137_v16 = vld [vmem:[%s1228_s1 + $0x378] sm:$0xff]  ;;  %v731_v17 = vpack.c.bf16 %v105_v12, %v104_v11  ;;  %s796_s1 = smov [#allocation2]  }
  0x38   :  { %754 = vmatprep.subr.bf16.mxu1 %v753_v54  ;;  %v763_v18 = vpack.c.bf16 %v137_v16, %v136_v15  ;;  %s487_s15 = sshll.u32 %s796_s1, 4  ;;  %s488_s15 = int_to_ptr.vmem [resolvable:$true] %s487_s15 }
  0x39   :  { %s770_s16 = scalar_lea.vmem %s488_s15, 32  ;;  %p775_p1 = scmp.lt.s32.totalorder %s488_s15, %s488_s15 }
  0x3a   :  { %724 = vmatpush3.bf16.msra.mxu0 %v723_v60  ;;  %p771_p0 = scmp.ne.s32.totalorder %s488_s15, %s770_s16  ;;  %p776_p2 = scmp.lt.s32.totalorder %s770_s16, %s770_s16 }
  0x3b   :  { %756 = vmatpush3.bf16.msra.mxu1 %v755_v61  ;;  %726 = vmatprep.subr.bf16.mxu0 %v725_v62 }
  0x3c   :  { %758 = vmatprep.subr.bf16.mxu1 %v757_v2  ;;  %p777_p3 = por %p776_p2, %p775_p1 }
  0x3e   :  { %728 = vmatpush3.bf16.msra.mxu0 %v727_v8  ;;  %p778_p4 = pnand %p777_p3, %p771_p0 }
  0x3f   :  { %760 = vmatpush3.bf16.msra.mxu1 %v759_v9  ;;  %730 = vmatprep.subr.bf16.mxu0 %v729_v10 }
  0x40   :  { %762 = vmatprep.subr.bf16.mxu1 %v761_v14 }
  0x42   :  { %732 = vmatpush3.bf16.msra.mxu0 %v731_v17 }
  0x43   :  { %764 = vmatpush3.bf16.msra.mxu1 %v763_v18 }
  0x45   :  { %403 = vmatmul.mubr.f32.vlgmr.msra.gmra.mrb[2].mxu0 %v1123_v33  ;;  %v25_v33 = vld [vmem:[#allocation2] sm:$0x3] }
  0x46   :  { %473 = vmatmul.mubr.f32.vlgmr.msra.gmra.mrb[2].mxu1 %v187_v45 }
  0xf8   :  { %v529_v20 = vpop.f32.mrb[0].mxu0 }
  0xf9   :  { %v564_v21 = vpop.f32.mrb[0].mxu1  ;;  %v530_v22 = vpop.f32.mrb[1].mxu0 }
  0xfa   :  { %v531_v23 = vadd.f32 %v530_v22, %v529_v20  ;;  %v565_v24 = vpop.f32.mrb[1].mxu1 }
  0xfb   :  { %v566_v25 = vadd.f32 %v565_v24, %v564_v21 }
  0xfd   :  { %v335_v26 = vadd.f32 %v566_v25, %v531_v23 }
 0x118   :  { %v599_v27 = vpop.f32.mrb[2].mxu0 }
 0x119   :  { %v600_v28 = vpop.f32.mrb[3].mxu0  ;;  %v634_v29 = vpop.f32.mrb[2].mxu1 }
 0x11a   :  { %v601_v30 = vadd.f32 %v600_v28, %v599_v27  ;;  %v635_v31 = vpop.f32.mrb[3].mxu1 }
 0x11b   :  { %v636_v32 = vadd.f32 %v635_v31, %v634_v29 }
 0x11c   :  { %v405_v34 = vadd.f32 %v601_v30, %v335_v26 }
 0x11e   :  { %v475_v35 = vadd.f32 %v636_v32, %v405_v34 }
 0x120   :  { %v478_v36 = vadd.f32 %v475_v35, %v25_v33 }
 0x122   :  { %480 = vst.msk [vmem:[#allocation2] sm:$0x3] %vm16_vm0, %v478_v36 }
 0x123   :  { %781 = shalt.err (!%p778_p4)
}
 0x124   :  { %s782_s19 = scalar_lea.hbm %s1229_s2, 32 }
 0x125   :  { %p783_p5 = scmp.ne.s32.totalorder %s1229_s2, %s782_s19  ;;  %p786_p6 = scmp.lt.u32.totalorder %s782_s19, %s1229_s2 }
 0x127   :  { %p788_p7 = pnand %p786_p6, %p783_p5 }
 0x129   :  { %791 = shalt.err (!%p788_p7)
}
 0x12a   :  { %490 = dma.vmem_to_hbm [thread:$0]  %s488_s15, 32, %s1229_s2, [#allocation3]  }
 0x12b   :  { %792 = dma.done.wait [#allocation3], 32  }
 0x12c   :  { %793 = vsyncadd [#allocation3], 4294967264 }
 0x12d   :  { %494 = vsyncpa [#allocation3], 1 }

</bundles_post_ra>
